<compile_context>
chip_gen: v7x
topology: tpu7x:2x2x1
jax: 0.10.0
libtpu: 0.0.40
codegen_flags: <defaults>
</compile_context>

<pallas_src>
import functools
import math

import jax
import jax.numpy as jnp
from jax import lax
from jax.experimental import pallas as pl
from jax.experimental.pallas import tpu as pltpu

# ---- module hyperparameters (stand-in for Options().parse()) ----------------
ODEFC = 2                 # opt.odefc
GATTNORM = "ln"           # opt.gattnorm
GATTACTIVATION = "gelu"   # opt.gattactivation
LN_EPS = 1e-5             # nn.LayerNorm default eps


# ---- kernel ------------------------------------------------------------------
def _fused_odefunc_kernel(num_layers, use_seg_matmul, x_ref, *refs):
    # refs layout:
    #   [seg_avg_ref]              (only when use_seg_matmul)
    #   wt_0, b_0, g_0, beta_0, ..., wt_{L-1}, ..., beta_{L-1},
    #   o_ref                      (last)
    o_ref = refs[-1]
    if use_seg_matmul:
        seg_avg = refs[0][...].astype(jnp.float32)   # (P, P) block-diag 1/dim
        p_refs = refs[1:-1]
    else:
        seg_avg = None
        p_refs = refs[:-1]

    y = x_ref[...].astype(jnp.float32)
    inv_sqrt2 = jnp.float32(1.0 / math.sqrt(2.0))

    for i in range(num_layers):          # unrolled: ODEFC is a static constant
        wt_ref, b_ref, g_ref, be_ref = p_refs[4 * i: 4 * i + 4]
        wt = wt_ref[...].astype(jnp.float32)
        b = b_ref[...].astype(jnp.float32)
        gamma = g_ref[...].astype(jnp.float32)
        beta = be_ref[...].astype(jnp.float32)

        # Linear: y @ W^T + b (MXU). In the packed path W is block-diagonal,
        # applying the same dim x dim linear to each packed segment.
        y = jnp.dot(y, wt, preferred_element_type=jnp.float32) + b

        # LayerNorm over each logical feature segment (biased variance).
        if use_seg_matmul:
            # Segmented mean/var via block-diagonal averaging matmul (MXU),
            # keeping everything lane-dense at width 128.
            mean = jnp.dot(y, seg_avg, preferred_element_type=jnp.float32)
            cent = y - mean
            var = jnp.dot(cent * cent, seg_avg,
                          preferred_element_type=jnp.float32)
        else:
            mean = jnp.mean(y, axis=-1, keepdims=True)
            cent = y - mean
            var = jnp.mean(cent * cent, axis=-1, keepdims=True)
        y = cent * lax.rsqrt(var + LN_EPS)
        y = y * gamma + beta

        # GELU, exact erf form (matches nn.GELU() default)
        y = 0.5 * y * (1.0 + lax.erf(y * inv_sqrt2))

    o_ref[...] = y.astype(o_ref.dtype)


# ---- helpers -----------------------------------------------------------------
def _round_up(x, m):
    return (x + m - 1) // m * m


def _choose_tile_rows(rows, width, requested=None):
    """Row tile: big enough to amortize per-step overhead, small enough to keep
    double-buffered in+out activation tiles comfortably inside scoped VMEM."""
    if requested is not None:
        t = requested
    else:
        budget_bytes = 2 * 1024 * 1024          # per single activation buffer
        t = max(8, budget_bytes // (width * 4))
        t = min(t, 2048)
    t = min(t, _round_up(rows, 8))              # don't exceed (padded) rows
    t = max(8, (t // 8) * 8)                    # sublane multiple
    return t


def _pack_factor(dim):
    """How many logical rows to pack per physical row so lanes are full."""
    if dim < 128 and 128 % dim == 0:
        return 128 // dim
    return 1


# ---- params ------------------------------------------------------------------
def init_odefunc_params(key, dim):
    """Deterministic init mimicking PyTorch defaults, prepared for the kernel:
    weight stored transposed (in, out); bias/gamma/beta as (1, dim)."""
    params = []
    k = 1.0 / math.sqrt(dim)
    for _ in range(ODEFC):
        key, kw, kb = jax.random.split(key, 3)
        w = jax.random.uniform(kw, (dim, dim), jnp.float32, -k, k)   # (out, in)
        b = jax.random.uniform(kb, (dim,), jnp.float32, -k, k)
        params.append((
            jnp.transpose(w),                    # (in, out): y = x @ w_t
            b.reshape(1, dim),
            jnp.ones((1, dim), jnp.float32),     # LayerNorm gamma
            jnp.zeros((1, dim), jnp.float32),    # LayerNorm beta
        ))
    return params


def _pack_params(params, dim, g):
    """Expand params for the lane-packed path: block-diag weights, tiled vecs."""
    eye_g = jnp.eye(g, dtype=jnp.float32)
    packed = []
    for (w_t, b, gamma, beta) in params:
        packed.append((
            jnp.kron(eye_g, w_t.astype(jnp.float32)),     # (g*dim, g*dim)
            jnp.tile(b.astype(jnp.float32), (1, g)),       # (1, g*dim)
            jnp.tile(gamma.astype(jnp.float32), (1, g)),
            jnp.tile(beta.astype(jnp.float32), (1, g)),
        ))
    seg_avg = jnp.kron(eye_g, jnp.full((dim, dim), 1.0 / dim, jnp.float32))
    return packed, seg_avg


# ---- forward -----------------------------------------------------------------
def odefunc_forward(t, x, params, *, tile_rows=None):
    """Equivalent of ODEFunc.forward(t, x): t is ignored."""
    del t
    orig_shape = x.shape
    dim = orig_shape[-1]
    x2d = x.reshape(-1, dim)
    rows = x2d.shape[0]

    g = _pack_factor(dim)
    P = g * dim                                  # physical lane width
    num_layers = len(params)

    if g > 1:
        layer_params, seg_avg = _pack_params(params, dim, g)
        extra_inputs = [seg_avg]
        extra_specs = [pl.BlockSpec((P, P), lambda i: (0, 0))]
    else:
        layer_params = params
        extra_inputs = []
        extra_specs = []

    rows_g = _round_up(rows, g)
    packed_rows = rows_g // g
    tile = _choose_tile_rows(packed_rows, P, tile_rows)
    padded_packed = _round_up(packed_rows, tile)

    pad_rows = padded_packed * g - rows
    if pad_rows:
        x2d = jnp.pad(x2d, ((0, pad_rows), (0, 0)))
    xp = x2d.reshape(padded_packed, P)           # row-major contiguous (free)

    flat_params = [p for layer in layer_params for p in layer]

    x_spec = pl.BlockSpec((tile, P), lambda i: (i, 0))
    param_specs = []
    for _ in range(num_layers):
        param_specs += [
            pl.BlockSpec((P, P), lambda i: (0, 0)),   # weight (VMEM-resident)
            pl.BlockSpec((1, P), lambda i: (0, 0)),   # bias
            pl.BlockSpec((1, P), lambda i: (0, 0)),   # gamma
            pl.BlockSpec((1, P), lambda i: (0, 0)),   # beta
        ]

    out = pl.pallas_call(
        functools.partial(_fused_odefunc_kernel, num_layers, g > 1),
        out_shape=jax.ShapeDtypeStruct((padded_packed, P), x.dtype),
        grid_spec=pltpu.PrefetchScalarGridSpec(
            num_scalar_prefetch=0,
            grid=(padded_packed // tile,),
            in_specs=[x_spec] + extra_specs + param_specs,
            out_specs=pl.BlockSpec((tile, P), lambda i: (i, 0)),
        ),
        compiler_params=pltpu.CompilerParams(
            dimension_semantics=("parallel",),
        ),
    )(xp, *extra_inputs, *flat_params)

    out = out.reshape(padded_packed * g, dim)
    if pad_rows:
        out = out[:rows]
    return out.reshape(orig_shape)


# ---- plain-JAX reference for sanity ------------------------------------------
def _reference(t, x, params):
    del t
    for (w_t, b, gamma, beta) in params:
        x = x @ w_t + b
        mean = jnp.mean(x, axis=-1, keepdims=True)
        var = jnp.mean((x - mean) ** 2, axis=-1, keepdims=True)
        x = (x - mean) / jnp.sqrt(var + LN_EPS)
        x = x * gamma + beta
        x = 0.5 * x * (1.0 + lax.erf(x / math.sqrt(2.0)))
    return x


if __name__ == "__main__":
    key = jax.random.PRNGKey(0)

    # --- main case: dim < 128 exercises the lane-packed path -----------------
    kx, kp, key = jax.random.split(key, 3)
    B, N, DIM = 2, 8, 32          # (batch, nodes, feature_dim)
    x = jax.random.normal(kx, (B, N, DIM), jnp.float32)
    t = jnp.float32(0.0)          # ignored, kept for interface parity
    params = init_odefunc_params(kp, DIM)

    out = jax.block_until_ready(odefunc_forward(t, x, params))
    ref = _reference(t, x, params)
    assert out.shape == x.shape
    assert jnp.allclose(out, ref, atol=1e-5, rtol=1e-5), "mismatch (packed path)"

    # --- secondary case: dim == 128 exercises the plain path -----------------
    kx2, kp2, key = jax.random.split(key, 3)
    DIM2 = 128
    x2 = jax.random.normal(kx2, (2, 8, DIM2), jnp.float32)
    params2 = init_odefunc_params(kp2, DIM2)

    out2 = jax.block_until_ready(odefunc_forward(t, x2, params2))
    ref2 = _reference(t, x2, params2)
    assert out2.shape == x2.shape
    assert jnp.allclose(out2, ref2, atol=1e-5, rtol=1e-5), "mismatch (plain path)"

    print("KERNEL_OK")
</pallas_src>

<mosaic_0001>
module attributes {stable_mosaic.version = 11 : i64} {
  func.func @_fused_odefunc_kernel(%arg0: i32, %arg1: memref<8x128xf32, #tpu.memory_space<vmem>>, %arg2: memref<128x128xf32, #tpu.memory_space<vmem>>, %arg3: memref<128x128xf32, #tpu.memory_space<vmem>>, %arg4: memref<1x128xf32, #tpu.memory_space<vmem>>, %arg5: memref<1x128xf32, #tpu.memory_space<vmem>>, %arg6: memref<1x128xf32, #tpu.memory_space<vmem>>, %arg7: memref<128x128xf32, #tpu.memory_space<vmem>>, %arg8: memref<1x128xf32, #tpu.memory_space<vmem>>, %arg9: memref<1x128xf32, #tpu.memory_space<vmem>>, %arg10: memref<1x128xf32, #tpu.memory_space<vmem>>, %arg11: memref<8x128xf32, #tpu.memory_space<vmem>>) attributes {dimension_semantics = [#tpu.dimension_semantics<parallel>], iteration_bounds = array<i64: 1>, scalar_prefetch = 0 : i64, scratch_operands = 0 : i64, tpu.core_type = #tpu.core_type<tc>, window_params = [{transform_indices = @transform_0, window_bounds = array<i64: 8, 128>}, {pipeline_mode = #tpu.pipeline_mode<synchronous>, transform_indices = @transform_1, window_bounds = array<i64: 128, 128>}, {pipeline_mode = #tpu.pipeline_mode<synchronous>, transform_indices = @transform_2, window_bounds = array<i64: 128, 128>}, {pipeline_mode = #tpu.pipeline_mode<synchronous>, transform_indices = @transform_3, window_bounds = array<i64: 1, 128>}, {pipeline_mode = #tpu.pipeline_mode<synchronous>, transform_indices = @transform_4, window_bounds = array<i64: 1, 128>}, {pipeline_mode = #tpu.pipeline_mode<synchronous>, transform_indices = @transform_5, window_bounds = array<i64: 1, 128>}, {pipeline_mode = #tpu.pipeline_mode<synchronous>, transform_indices = @transform_6, window_bounds = array<i64: 128, 128>}, {pipeline_mode = #tpu.pipeline_mode<synchronous>, transform_indices = @transform_7, window_bounds = array<i64: 1, 128>}, {pipeline_mode = #tpu.pipeline_mode<synchronous>, transform_indices = @transform_8, window_bounds = array<i64: 1, 128>}, {pipeline_mode = #tpu.pipeline_mode<synchronous>, transform_indices = @transform_9, window_bounds = array<i64: 1, 128>}, {transform_indices = @transform_10, window_bounds = array<i64: 8, 128>}]} {
    %c0 = arith.constant 0 : index
    %c0_0 = arith.constant 0 : index
    %0 = vector.load %arg2[%c0, %c0_0] : memref<128x128xf32, #tpu.memory_space<vmem>>, vector<128x128xf32>
    %c0_1 = arith.constant 0 : index
    %c0_2 = arith.constant 0 : index
    %1 = vector.load %arg1[%c0_1, %c0_2] : memref<8x128xf32, #tpu.memory_space<vmem>>, vector<8x128xf32>
    %c0_3 = arith.constant 0 : index
    %c0_4 = arith.constant 0 : index
    %2 = vector.load %arg3[%c0_3, %c0_4] : memref<128x128xf32, #tpu.memory_space<vmem>>, vector<128x128xf32>
    %c0_5 = arith.constant 0 : index
    %c0_6 = arith.constant 0 : index
    %3 = vector.load %arg4[%c0_5, %c0_6] : memref<1x128xf32, #tpu.memory_space<vmem>>, vector<1x128xf32>
    %c0_7 = arith.constant 0 : index
    %c0_8 = arith.constant 0 : index
    %4 = vector.load %arg5[%c0_7, %c0_8] : memref<1x128xf32, #tpu.memory_space<vmem>>, vector<1x128xf32>
    %c0_9 = arith.constant 0 : index
    %c0_10 = arith.constant 0 : index
    %5 = vector.load %arg6[%c0_9, %c0_10] : memref<1x128xf32, #tpu.memory_space<vmem>>, vector<1x128xf32>
    %cst = arith.constant dense<0.000000e+00> : vector<8x128xf32>
    %6 = tpu.matmul %1, %2, %cst {dimension_numbers = #tpu.dot_dimension_numbers<[1], [0], [0], [1], [0, 0, 1, 1], [], []>} : vector<8x128xf32>, vector<128x128xf32>, vector<8x128xf32> -> vector<8x128xf32>
    %7 = vector.broadcast %3 : vector<1x128xf32> to vector<8x128xf32>
    %8 = arith.addf %6, %7 : vector<8x128xf32>
    %cst_11 = arith.constant dense<0.000000e+00> : vector<8x128xf32>
    %9 = tpu.matmul %8, %0, %cst_11 {dimension_numbers = #tpu.dot_dimension_numbers<[1], [0], [0], [1], [0, 0, 1, 1], [], []>} : vector<8x128xf32>, vector<128x128xf32>, vector<8x128xf32> -> vector<8x128xf32>
    %10 = arith.subf %8, %9 : vector<8x128xf32>
    %11 = arith.mulf %10, %10 : vector<8x128xf32>
    %cst_12 = arith.constant dense<0.000000e+00> : vector<8x128xf32>
    %12 = tpu.matmul %11, %0, %cst_12 {dimension_numbers = #tpu.dot_dimension_numbers<[1], [0], [0], [1], [0, 0, 1, 1], [], []>} : vector<8x128xf32>, vector<128x128xf32>, vector<8x128xf32> -> vector<8x128xf32>
    %cst_13 = arith.constant 9.99999974E-6 : f32
    %13 = vector.broadcast %cst_13 : f32 to vector<8x128xf32>
    %14 = arith.addf %12, %13 : vector<8x128xf32>
    %15 = math.rsqrt %14 : vector<8x128xf32>
    %16 = arith.mulf %10, %15 : vector<8x128xf32>
    %17 = vector.broadcast %4 : vector<1x128xf32> to vector<8x128xf32>
    %18 = arith.mulf %16, %17 : vector<8x128xf32>
    %19 = vector.broadcast %5 : vector<1x128xf32> to vector<8x128xf32>
    %20 = arith.addf %18, %19 : vector<8x128xf32>
    %cst_14 = arith.constant 5.000000e-01 : f32
    %21 = vector.broadcast %cst_14 : f32 to vector<8x128xf32>
    %22 = arith.mulf %21, %20 : vector<8x128xf32>
    %cst_15 = arith.constant 0.707106769 : f32
    %23 = vector.broadcast %cst_15 : f32 to vector<8x128xf32>
    %24 = arith.mulf %20, %23 : vector<8x128xf32>
    %25 = math.erf %24 : vector<8x128xf32>
    %cst_16 = arith.constant 1.000000e+00 : f32
    %26 = vector.broadcast %cst_16 : f32 to vector<8x128xf32>
    %27 = arith.addf %26, %25 : vector<8x128xf32>
    %28 = arith.mulf %22, %27 : vector<8x128xf32>
    %c0_17 = arith.constant 0 : index
    %c0_18 = arith.constant 0 : index
    %29 = vector.load %arg7[%c0_17, %c0_18] : memref<128x128xf32, #tpu.memory_space<vmem>>, vector<128x128xf32>
    %c0_19 = arith.constant 0 : index
    %c0_20 = arith.constant 0 : index
    %30 = vector.load %arg8[%c0_19, %c0_20] : memref<1x128xf32, #tpu.memory_space<vmem>>, vector<1x128xf32>
    %c0_21 = arith.constant 0 : index
    %c0_22 = arith.constant 0 : index
    %31 = vector.load %arg9[%c0_21, %c0_22] : memref<1x128xf32, #tpu.memory_space<vmem>>, vector<1x128xf32>
    %c0_23 = arith.constant 0 : index
    %c0_24 = arith.constant 0 : index
    %32 = vector.load %arg10[%c0_23, %c0_24] : memref<1x128xf32, #tpu.memory_space<vmem>>, vector<1x128xf32>
    %cst_25 = arith.constant dense<0.000000e+00> : vector<8x128xf32>
    %33 = tpu.matmul %28, %29, %cst_25 {dimension_numbers = #tpu.dot_dimension_numbers<[1], [0], [0], [1], [0, 0, 1, 1], [], []>} : vector<8x128xf32>, vector<128x128xf32>, vector<8x128xf32> -> vector<8x128xf32>
    %34 = vector.broadcast %30 : vector<1x128xf32> to vector<8x128xf32>
    %35 = arith.addf %33, %34 : vector<8x128xf32>
    %cst_26 = arith.constant dense<0.000000e+00> : vector<8x128xf32>
    %36 = tpu.matmul %35, %0, %cst_26 {dimension_numbers = #tpu.dot_dimension_numbers<[1], [0], [0], [1], [0, 0, 1, 1], [], []>} : vector<8x128xf32>, vector<128x128xf32>, vector<8x128xf32> -> vector<8x128xf32>
    %37 = arith.subf %35, %36 : vector<8x128xf32>
    %38 = arith.mulf %37, %37 : vector<8x128xf32>
    %cst_27 = arith.constant dense<0.000000e+00> : vector<8x128xf32>
    %39 = tpu.matmul %38, %0, %cst_27 {dimension_numbers = #tpu.dot_dimension_numbers<[1], [0], [0], [1], [0, 0, 1, 1], [], []>} : vector<8x128xf32>, vector<128x128xf32>, vector<8x128xf32> -> vector<8x128xf32>
    %cst_28 = arith.constant 9.99999974E-6 : f32
    %40 = vector.broadcast %cst_28 : f32 to vector<8x128xf32>
    %41 = arith.addf %39, %40 : vector<8x128xf32>
    %42 = math.rsqrt %41 : vector<8x128xf32>
    %43 = arith.mulf %37, %42 : vector<8x128xf32>
    %44 = vector.broadcast %31 : vector<1x128xf32> to vector<8x128xf32>
    %45 = arith.mulf %43, %44 : vector<8x128xf32>
    %46 = vector.broadcast %32 : vector<1x128xf32> to vector<8x128xf32>
    %47 = arith.addf %45, %46 : vector<8x128xf32>
    %cst_29 = arith.constant 5.000000e-01 : f32
    %48 = vector.broadcast %cst_29 : f32 to vector<8x128xf32>
    %49 = arith.mulf %48, %47 : vector<8x128xf32>
    %cst_30 = arith.constant 0.707106769 : f32
    %50 = vector.broadcast %cst_30 : f32 to vector<8x128xf32>
    %51 = arith.mulf %47, %50 : vector<8x128xf32>
    %52 = math.erf %51 : vector<8x128xf32>
    %cst_31 = arith.constant 1.000000e+00 : f32
    %53 = vector.broadcast %cst_31 : f32 to vector<8x128xf32>
    %54 = arith.addf %53, %52 : vector<8x128xf32>
    %55 = arith.mulf %49, %54 : vector<8x128xf32>
    %c0_32 = arith.constant 0 : index
    %c0_33 = arith.constant 0 : index
    %56 = vector.load %arg11[%c0_32, %c0_33] : memref<8x128xf32, #tpu.memory_space<vmem>>, vector<8x128xf32>
    tpu.vector_store %arg11[%c0_32, %c0_33], %55 {strides = array<i32>} : memref<8x128xf32, #tpu.memory_space<vmem>>, vector<8x128xf32>,
    return
  }
  func.func @transform_0(%arg0: i32) -> (i32, i32) {
    %c0_i32 = arith.constant 0 : i32
    %c0_i32_0 = arith.constant 0 : i32
    return %arg0, %c0_i32 : i32, i32
  }
  func.func @transform_1(%arg0: i32) -> (i32, i32) {
    %c0_i32 = arith.constant 0 : i32
    %c0_i32_0 = arith.constant 0 : i32
    %c0_i32_1 = arith.constant 0 : i32
    return %c0_i32, %c0_i32_0 : i32, i32
  }
  func.func @transform_2(%arg0: i32) -> (i32, i32) {
    %c0_i32 = arith.constant 0 : i32
    %c0_i32_0 = arith.constant 0 : i32
    %c0_i32_1 = arith.constant 0 : i32
    return %c0_i32, %c0_i32_0 : i32, i32
  }
  func.func @transform_3(%arg0: i32) -> (i32, i32) {
    %c0_i32 = arith.constant 0 : i32
    %c0_i32_0 = arith.constant 0 : i32
    %c0_i32_1 = arith.constant 0 : i32
    return %c0_i32, %c0_i32_0 : i32, i32
  }
  func.func @transform_4(%arg0: i32) -> (i32, i32) {
    %c0_i32 = arith.constant 0 : i32
    %c0_i32_0 = arith.constant 0 : i32
    %c0_i32_1 = arith.constant 0 : i32
    return %c0_i32, %c0_i32_0 : i32, i32
  }
  func.func @transform_5(%arg0: i32) -> (i32, i32) {
    %c0_i32 = arith.constant 0 : i32
    %c0_i32_0 = arith.constant 0 : i32
    %c0_i32_1 = arith.constant 0 : i32
    return %c0_i32, %c0_i32_0 : i32, i32
  }
  func.func @transform_6(%arg0: i32) -> (i32, i32) {
    %c0_i32 = arith.constant 0 : i32
    %c0_i32_0 = arith.constant 0 : i32
    %c0_i32_1 = arith.constant 0 : i32
    return %c0_i32, %c0_i32_0 : i32, i32
  }
  func.func @transform_7(%arg0: i32) -> (i32, i32) {
    %c0_i32 = arith.constant 0 : i32
    %c0_i32_0 = arith.constant 0 : i32
    %c0_i32_1 = arith.constant 0 : i32
    return %c0_i32, %c0_i32_0 : i32, i32
  }
  func.func @transform_8(%arg0: i32) -> (i32, i32) {
    %c0_i32 = arith.constant 0 : i32
    %c0_i32_0 = arith.constant 0 : i32
    %c0_i32_1 = arith.constant 0 : i32
    return %c0_i32, %c0_i32_0 : i32, i32
  }
  func.func @transform_9(%arg0: i32) -> (i32, i32) {
    %c0_i32 = arith.constant 0 : i32
    %c0_i32_0 = arith.constant 0 : i32
    %c0_i32_1 = arith.constant 0 : i32
    return %c0_i32, %c0_i32_0 : i32, i32
  }
  func.func @transform_10(%arg0: i32) -> (i32, i32) {
    %c0_i32 = arith.constant 0 : i32
    %c0_i32_0 = arith.constant 0 : i32
    return %arg0, %c0_i32 : i32, i32
  }
}

</mosaic_0001>

<bundles_post_ra>
// kernel: tpu_custom_call.1
= control target key start
LH: loop header
LB: loop body
LE: loop exit
PB: predicated region body
PF: predicated region fallthrough
CT: control target
= control target key end

     0   :  { %15 = vsyncpa [#allocation3], 0  ;;  %s1503_s0 = inlined_call_operand.hbm [shape: f32[8,128], index: 0, kind: input, shape index: {}]   ;;  %s1504_s1 = inlined_call_operand.hbm [shape: f32[128,128], index: 1, kind: input, shape index: {}]   ;;  %s1505_s2 = inlined_call_operand.hbm [shape: f32[128,128], index: 2, kind: input, shape index: {}]   ;;  %s1506_s3 = inlined_call_operand.vmem [shape: f32[1,128], index: 3, kind: input, shape index: {}]   ;;  %s1507_s4 = inlined_call_operand.vmem [shape: f32[1,128], index: 4, kind: input, shape index: {}]   ;;  %s1508_s5 = inlined_call_operand.vmem [shape: f32[1,128], index: 5, kind: input, shape index: {}]   ;;  %s1509_s6 = inlined_call_operand.hbm [shape: f32[128,128], index: 6, kind: input, shape index: {}]   ;;  %s1510_s7 = inlined_call_operand.vmem [shape: f32[1,128], index: 7, kind: input, shape index: {}]   ;;  %s1511_s8 = inlined_call_operand.vmem [shape: f32[1,128], index: 8, kind: input, shape index: {}]   ;;  %s1512_s9 = inlined_call_operand.vmem [shape: f32[1,128], index: 9, kind: input, shape index: {}]   ;;  %s1513_s10 = inlined_call_operand.hbm [shape: f32[8,128], index: 10, kind: output, shape index: {}]  }
   0x1   :  { %16 = vsyncpa [#allocation6], 0 }
   0x2   :  { %17 = vsyncpa [#allocation9], 0 }
   0x3   :  { %18 = vsyncpa [#allocation4], 0  ;;  %s1238_s13 = smov [#allocation5]   ;;  %s1120_s17 = scalar_lea.hbm %s1504_s1, 2048 }
   0x4   :  { %s34_s14 = sshll.u32 %s1238_s13, 4  ;;  %p1121_p0 = scmp.ne.s32.totalorder %s1504_s1, %s1120_s17  ;;  %s35_s14 = int_to_ptr.vmem [resolvable:$true] %s34_s14 }
   0x5   :  { %p1124_p1 = scmp.lt.u32.totalorder %s1120_s17, %s1504_s1 }
   0x7   :  { %p1126_p2 = pnand %p1124_p1, %p1121_p0 }
   0x9   :  { %1129 = shalt.err (!%p1126_p2)
}
   0xa   :  { %s1130_s22 = scalar_lea.vmem %s35_s14, 2048  ;;  %p1135_p4 = scmp.lt.s32.totalorder %s35_s14, %s35_s14 }
   0xb   :  { %p1131_p3 = scmp.ne.s32.totalorder %s35_s14, %s1130_s22  ;;  %p1136_p5 = scmp.lt.s32.totalorder %s1130_s22, %s1130_s22 }
   0xd   :  { %p1137_p6 = por %p1136_p5, %p1135_p4 }
   0xf   :  { %p1138_p7 = pnand %p1137_p6, %p1131_p3 }
  0x11   :  { %1141 = shalt.err (!%p1138_p7)
}
  0x12   :  { %s1239_s23 = smov 128   ;;  %s1240_s24 = smov 8  }
  0x13   :  { %40 = dma.hbm_to_vmem [thread:$0]  %s1504_s1, 2048, %s35_s14, [#allocation6], %s1239_s23, %s1239_s23, %s1240_s24  }
  0x14   :  { %s1241_s27 = smov [#allocation2]   ;;  %s1242_s29 = smov [#allocation7]  }
  0x15   :  { %s25_s28 = sshll.u32 %s1241_s27, 4  ;;  %s46_s30 = sshll.u32 %s1242_s29, 4  ;;  %s26_s28 = int_to_ptr.vmem [resolvable:$true] %s25_s28  ;;  %s47_s30 = int_to_ptr.vmem [resolvable:$true] %s46_s30 }
  0x16   :  { %s1142_s13 = scalar_lea.hbm %s1503_s0, 128 }
  0x17   :  { %p1143_p8 = scmp.ne.s32.totalorder %s1503_s0, %s1142_s13  ;;  %p1146_p9 = scmp.lt.u32.totalorder %s1142_s13, %s1503_s0 }
  0x19   :  { %p1148_p10 = pnand %p1146_p9, %p1143_p8 }
  0x1b   :  { %1151 = shalt.err (!%p1148_p10)
}
  0x1c   :  { %s1152_s1 = scalar_lea.vmem %s26_s28, 128  ;;  %p1157_p12 = scmp.lt.s32.totalorder %s26_s28, %s26_s28 }
  0x1d   :  { %p1153_p11 = scmp.ne.s32.totalorder %s26_s28, %s1152_s1  ;;  %p1158_p13 = scmp.lt.s32.totalorder %s1152_s1, %s1152_s1 }
  0x1f   :  { %p1159_p0 = por %p1158_p13, %p1157_p12 }
  0x21   :  { %p1160_p1 = pnand %p1159_p0, %p1153_p11 }
  0x23   :  { %1163 = shalt.err (!%p1160_p1)
}
  0x24   :  { %28 = dma.hbm_to_vmem [thread:$0]  %s1503_s0, 128, %s26_s28, [#allocation3]  }
  0x25   :  { %s1164_s22 = scalar_lea.hbm %s1505_s2, 2048 }
  0x26   :  { %p1165_p2 = scmp.ne.s32.totalorder %s1505_s2, %s1164_s22  ;;  %p1168_p3 = scmp.lt.u32.totalorder %s1164_s22, %s1505_s2 }
  0x28   :  { %p1170_p4 = pnand %p1168_p3, %p1165_p2 }
  0x2a   :  { %1173 = shalt.err (!%p1170_p4)
}
  0x2b   :  { %s1174_s11 = scalar_lea.vmem %s47_s30, 2048  ;;  %p1179_p6 = scmp.lt.s32.totalorder %s47_s30, %s47_s30 }
  0x2c   :  { %p1175_p5 = scmp.ne.s32.totalorder %s47_s30, %s1174_s11  ;;  %p1180_p7 = scmp.lt.s32.totalorder %s1174_s11, %s1174_s11 }
  0x2e   :  { %p1181_p8 = por %p1180_p7, %p1179_p6 }
  0x30   :  { %p1182_p9 = pnand %p1181_p8, %p1175_p5 }
  0x32   :  { %1185 = shalt.err (!%p1182_p9)
}
  0x33   :  { %52 = dma.hbm_to_vmem [thread:$0]  %s1505_s2, 2048, %s47_s30, [#allocation6], %s1239_s23, %s1239_s23, %s1240_s24  }
  0x34   :  { %s1243_s12 = smov [#allocation8]   ;;  %s1186_s17 = scalar_lea.hbm %s1509_s6, 2048 }
  0x35   :  { %s64_s13 = sshll.u32 %s1243_s12, 4  ;;  %p1187_p10 = scmp.ne.s32.totalorder %s1509_s6, %s1186_s17  ;;  %s65_s13 = int_to_ptr.vmem [resolvable:$true] %s64_s13 }
  0x36   :  { %p1190_p11 = scmp.lt.u32.totalorder %s1186_s17, %s1509_s6 }
  0x38   :  { %p1192_p12 = pnand %p1190_p11, %p1187_p10 }
  0x3a   :  { %1195 = shalt.err (!%p1192_p12)
}
  0x3b   :  { %s1196_s20 = scalar_lea.vmem %s65_s13, 2048  ;;  %p1201_p0 = scmp.lt.s32.totalorder %s65_s13, %s65_s13 }
  0x3c   :  { %p1197_p13 = scmp.ne.s32.totalorder %s65_s13, %s1196_s20  ;;  %p1202_p1 = scmp.lt.s32.totalorder %s1196_s20, %s1196_s20 }
  0x3e   :  { %p1203_p2 = por %p1202_p1, %p1201_p0 }
  0x40   :  { %p1204_p3 = pnand %p1203_p2, %p1197_p13 }
  0x42   :  { %1207 = shalt.err (!%p1204_p3)
}
  0x43   :  { %70 = dma.hbm_to_vmem [thread:$0]  %s1509_s6, 2048, %s65_s13, [#allocation9], %s1239_s23, %s1239_s23, %s1240_s24  }
  0x44   :  { %1230 = dma.done.wait [#allocation3], 128  }
  0x45   :  { %1231 = vsyncadd [#allocation3], 4294967168 }
  0x46   :  { %1232 = dma.done.wait [#allocation6], 4096  }
  0x47   :  { %1233 = vsyncadd [#allocation6], 4294963200 }
  0x48   :  { %1234 = dma.done.wait [#allocation9], 2048  }
  0x49   :  { %1235 = vsyncadd [#allocation9], 4294965248  ;;  %v1244_v0 = vmov 0.0|0.0   ;;  %vm1245_vm0 = vmmov 0   ;;  %v1246_v1 = vmov 0.0   ;;  %v106_v2 = vld [vmem:[#allocation7] sm:$0xff] }
  0x4a   :  { %958 = vmatprep.subr.bf16.mxu0 %v1244_v0  ;;  %780 = vmatprep.mubr.msk.f32.mxu0 %vm1245_vm0, %v1246_v1  ;;  %v107_v3 = vld [vmem:[#allocation7 + $0x8] sm:$0xff]  ;;  %v108_v4 = vld [vmem:[#allocation7 + $0x10] sm:$0xff]  ;;  %v109_v6 = vld [vmem:[#allocation7 + $0x18] sm:$0xff]  ;;  %s1247_s29 = smov [#allocation10]  }
  0x4b   :  { %982 = vmatprep.subr.bf16.mxu1 %v1244_v0  ;;  %815 = vmatprep.mubr.msk.f32.mxu1 %vm1245_vm0, %v1246_v1  ;;  %v959_v5 = vpack.c.bf16 %v107_v3, %v106_v2  ;;  %v962_v7 = vpack.c.bf16 %v109_v6, %v108_v4  ;;  %v110_v8 = vld [vmem:[#allocation7 + $0x20] sm:$0xff]  ;;  %v111_v9 = vld [vmem:[#allocation7 + $0x28] sm:$0xff]  ;;  %v91_v12 = vld [vmem:[#allocation5 + $0x10] sm:$0xff]  ;;  %s629_s11 = sshll.u32 %s1247_s29, 4  ;;  %s630_s11 = int_to_ptr.vmem [resolvable:$true] %s629_s11 }
  0x4c   :  { %v89_v10 = vld [vmem:[#allocation5] sm:$0xff]  ;;  %v90_v11 = vld [vmem:[#allocation5 + $0x8] sm:$0xff]  ;;  %v92_v13 = vld [vmem:[#allocation5 + $0x18] sm:$0xff]  ;;  %v965_v14 = vpack.c.bf16 %v111_v9, %v110_v8  ;;  %s1208_s0 = scalar_lea.vmem %s630_s11, 128  ;;  %p1213_p5 = scmp.lt.s32.totalorder %s630_s11, %s630_s11 }
  0x4d   :  { %960 = vmatpush3.bf16.msra.mxu0 %v959_v5  ;;  %v1367_v15 = vpack.c.bf16 %v90_v11, %v89_v10  ;;  %v112_v16 = vld [vmem:[#allocation7 + $0x30] sm:$0xff]  ;;  %v113_v17 = vld [vmem:[#allocation7 + $0x38] sm:$0xff]  ;;  %v1371_v18 = vpack.c.bf16 %v92_v13, %v91_v12  ;;  %v93_v19 = vld [vmem:[#allocation5 + $0x20] sm:$0xff]  ;;  %p1209_p4 = scmp.ne.s32.totalorder %s630_s11, %s1208_s0  ;;  %p1214_p6 = scmp.lt.s32.totalorder %s1208_s0, %s1208_s0 }
  0x4e   :  { %961 = vmatprep.subr.bf16.mxu0 %v1244_v0  ;;  %v94_v20 = vld [vmem:[#allocation5 + $0x28] sm:$0xff]  ;;  %v968_v21 = vpack.c.bf16 %v113_v17, %v112_v16  ;;  %v114_v22 = vld [vmem:[#allocation7 + $0x40] sm:$0xff]  ;;  %v95_v25 = vld [vmem:[#allocation5 + $0x30] sm:$0xff] }
  0x4f   :  { %984 = vmatpush3.bf16.msra.mxu1 %v1367_v15  ;;  %v115_v23 = vld [vmem:[#allocation7 + $0x48] sm:$0xff]  ;;  %v1376_v24 = vpack.c.bf16 %v94_v20, %v93_v19  ;;  %v96_v26 = vld [vmem:[#allocation5 + $0x38] sm:$0xff]  ;;  %v116_v28 = vld [vmem:[#allocation7 + $0x50] sm:$0xff]  ;;  %p1215_p7 = por %p1214_p6, %p1213_p5 }
  0x50   :  { %985 = vmatprep.subr.bf16.mxu1 %v1244_v0  ;;  %v971_v27 = vpack.c.bf16 %v115_v23, %v114_v22  ;;  %v117_v29 = vld [vmem:[#allocation7 + $0x58] sm:$0xff]  ;;  %v1381_v30 = vpack.c.bf16 %v96_v26, %v95_v25  ;;  %v97_v31 = vld [vmem:[#allocation5 + $0x40] sm:$0xff]  ;;  %v98_v32 = vld [vmem:[#allocation5 + $0x48] sm:$0xff] }
  0x51   :  { %963 = vmatpush3.bf16.msra.mxu0 %v962_v7  ;;  %v974_v33 = vpack.c.bf16 %v117_v29, %v116_v28  ;;  %v118_v34 = vld [vmem:[#allocation7 + $0x60] sm:$0xff]  ;;  %v119_v35 = vld [vmem:[#allocation7 + $0x68] sm:$0xff]  ;;  %v1386_v36 = vpack.c.bf16 %v98_v32, %v97_v31  ;;  %v99_v37 = vld [vmem:[#allocation5 + $0x50] sm:$0xff]  ;;  %p1216_p8 = pnand %p1215_p7, %p1209_p4 }
  0x52   :  { %964 = vmatprep.subr.bf16.mxu0 %v1244_v0  ;;  %v100_v38 = vld [vmem:[#allocation5 + $0x58] sm:$0xff]  ;;  %v977_v39 = vpack.c.bf16 %v119_v35, %v118_v34  ;;  %v120_v40 = vld [vmem:[#allocation7 + $0x70] sm:$0xff]  ;;  %v101_v43 = vld [vmem:[#allocation5 + $0x60] sm:$0xff] }
  0x53   :  { %987 = vmatpush3.bf16.msra.mxu1 %v1371_v18  ;;  %v121_v41 = vld [vmem:[#allocation7 + $0x78] sm:$0xff]  ;;  %v1391_v42 = vpack.c.bf16 %v100_v38, %v99_v37  ;;  %v102_v44 = vld [vmem:[#allocation5 + $0x68] sm:$0xff]  ;;  %v103_v48 = vld [vmem:[#allocation5 + $0x70] sm:$0xff] }
  0x54   :  { %988 = vmatprep.subr.bf16.mxu1 %v1244_v0  ;;  %v980_v45 = vpack.c.bf16 %v121_v41, %v120_v40  ;;  %v1396_v46 = vpack.c.bf16 %v102_v44, %v101_v43  ;;  %v105_v47 = vld [vmem:[#allocation2] sm:$0xff]  ;;  %v364_v59 = vld [vmem:[#allocation8] sm:$0xff]  ;;  %v365_v60 = vld [vmem:[#allocation8 + $0x8] sm:$0xff] }
  0x55   :  { %966 = vmatpush3.bf16.msra.mxu0 %v965_v14  ;;  %v104_v49 = vld [vmem:[#allocation5 + $0x78] sm:$0xff]  ;;  %v1031_v61 = vpack.c.bf16 %v365_v60, %v364_v59  ;;  %v366_v62 = vld [vmem:[#allocation8 + $0x10] sm:$0xff]  ;;  %v368_v3 = vld [vmem:[#allocation8 + $0x20] sm:$0xff] }
  0x56   :  { %967 = vmatprep.subr.bf16.mxu0 %v1244_v0  ;;  %v1418_v50 = vpack.c.bf16 %v104_v49, %v103_v48  ;;  %v640_v51 = vld [vmem:[%s1506_s3] ss:$0 sm:$0xff]  ;;  %v369_v4 = vld [vmem:[#allocation8 + $0x28] sm:$0xff]  ;;  %v370_v6 = vld [vmem:[#allocation8 + $0x30] sm:$0xff] }
  0x57   :  { %990 = vmatpush3.bf16.msra.mxu1 %v1376_v24  ;;  %v367_v63 = vld [vmem:[#allocation8 + $0x18] sm:$0xff]  ;;  %v1037_v5 = vpack.c.bf16 %v369_v4, %v368_v3  ;;  %v372_v9 = vld [vmem:[#allocation8 + $0x40] sm:$0xff]  ;;  %v373_v10 = vld [vmem:[#allocation8 + $0x48] sm:$0xff] }
  0x58   :  { %991 = vmatprep.subr.bf16.mxu1 %v1244_v0  ;;  %v1034_v2 = vpack.c.bf16 %v367_v63, %v366_v62  ;;  %v371_v7 = vld [vmem:[#allocation8 + $0x38] sm:$0xff]  ;;  %v1043_v11 = vpack.c.bf16 %v373_v10, %v372_v9  ;;  %v374_v12 = vld [vmem:[#allocation8 + $0x50] sm:$0xff]  ;;  %v376_v16 = vld [vmem:[#allocation8 + $0x60] sm:$0xff] }
  0x59   :  { %969 = vmatpush3.bf16.msra.mxu0 %v968_v21  ;;  %v1040_v8 = vpack.c.bf16 %v371_v7, %v370_v6  ;;  %v375_v13 = vld [vmem:[#allocation8 + $0x58] sm:$0xff]  ;;  %v377_v17 = vld [vmem:[#allocation8 + $0x68] sm:$0xff]  ;;  %v378_v20 = vld [vmem:[#allocation8 + $0x70] sm:$0xff] }
  0x5a   :  { %970 = vmatprep.subr.bf16.mxu0 %v1244_v0  ;;  %v1046_v14 = vpack.c.bf16 %v375_v13, %v374_v12  ;;  %v1049_v19 = vpack.c.bf16 %v377_v17, %v376_v16  ;;  %v379_v21 = vld [vmem:[#allocation8 + $0x78] sm:$0xff] }
  0x5b   :  { %993 = vmatpush3.bf16.msra.mxu1 %v1381_v30  ;;  %v1052_v22 = vpack.c.bf16 %v379_v21, %v378_v20  ;;  %v641_v28 = vld [vmem:[%s1507_s4] ss:$0 sm:$0xff] }
  0x5c   :  { %994 = vmatprep.subr.bf16.mxu1 %v1244_v0  ;;  %v642_v31 = vld [vmem:[%s1508_s5] ss:$0 sm:$0xff] }
  0x5d   :  { %972 = vmatpush3.bf16.msra.mxu0 %v971_v27 }
  0x5e   :  { %973 = vmatprep.subr.bf16.mxu0 %v1244_v0 }
  0x5f   :  { %996 = vmatpush3.bf16.msra.mxu1 %v1386_v36 }
  0x60   :  { %997 = vmatprep.subr.bf16.mxu1 %v1244_v0 }
  0x61   :  { %975 = vmatpush3.bf16.msra.mxu0 %v974_v33 }
  0x62   :  { %976 = vmatprep.subr.bf16.mxu0 %v1244_v0 }
  0x63   :  { %999 = vmatpush3.bf16.msra.mxu1 %v1391_v42 }
  0x64   :  { %1000 = vmatprep.subr.bf16.mxu1 %v1244_v0 }
  0x65   :  { %978 = vmatpush3.bf16.msra.mxu0 %v977_v39 }
  0x66   :  { %979 = vmatprep.subr.bf16.mxu0 %v1244_v0 }
  0x67   :  { %1002 = vmatpush3.bf16.msra.mxu1 %v1396_v46 }
  0x68   :  { %1003 = vmatprep.subr.bf16.mxu1 %v1244_v0 }
  0x69   :  { %981 = vmatpush3.bf16.msra.mxu0 %v980_v45  ;;  %v644_v45 = vld [vmem:[%s1511_s8] ss:$0 sm:$0xff] }
  0x6a   :  { %1006 = vmatprep.subr.bf16.mxu0 %v1244_v0 }
  0x6b   :  { %1005 = vmatpush3.bf16.msra.mxu1 %v1418_v50 }
  0x6c   :  { %781 = vmatmul.mubr.f32.vlgmr.msra.gmra.mrb[0].mxu0 %v105_v47  ;;  %1030 = vmatprep.subr.bf16.mxu1 %v1244_v0  ;;  %v645_v47 = vld [vmem:[%s1512_s9] ss:$0 sm:$0xff] }
  0x6d   :  { %1008 = vmatpush3.bf16.msra.mxu0 %v1367_v15  ;;  %850 = vmatprep.mubr.msk.f32.mxu0 %vm1245_vm0, %v1246_v1 }
  0x6e   :  { %1009 = vmatprep.subr.bf16.mxu0 %v1244_v0 }
  0x71   :  { %1011 = vmatpush3.bf16.msra.mxu0 %v1371_v18 }
  0x72   :  { %1012 = vmatprep.subr.bf16.mxu0 %v1244_v0 }
  0x75   :  { %1014 = vmatpush3.bf16.msra.mxu0 %v1376_v24 }
  0x76   :  { %1015 = vmatprep.subr.bf16.mxu0 %v1244_v0 }
  0x79   :  { %1017 = vmatpush3.bf16.msra.mxu0 %v1381_v30 }
  0x7a   :  { %1018 = vmatprep.subr.bf16.mxu0 %v1244_v0 }
  0x7d   :  { %1020 = vmatpush3.bf16.msra.mxu0 %v1386_v36 }
  0x7e   :  { %1021 = vmatprep.subr.bf16.mxu0 %v1244_v0 }
  0x81   :  { %1023 = vmatpush3.bf16.msra.mxu0 %v1391_v42 }
  0x82   :  { %1024 = vmatprep.subr.bf16.mxu0 %v1244_v0 }
  0x85   :  { %1026 = vmatpush3.bf16.msra.mxu0 %v1396_v46 }
  0x86   :  { %1027 = vmatprep.subr.bf16.mxu0 %v1244_v0 }
  0x89   :  { %1029 = vmatpush3.bf16.msra.mxu0 %v1418_v50 }
  0x8a   :  { %1054 = vmatprep.subr.bf16.mxu0 %v1244_v0 }
 0x13f   :  { %v197_v52 = vpop.f32.mrb[0].mxu0 }
 0x140   :  { %v198_v53 = vadd.f32 %v640_v51, %v197_v52  ;;  %v782_v54 = vpop.f32.mrb[1].mxu0 }
 0x142   :  { %816 = vmatmul.mubr.f32.vlgmr.msra.gmra.mrb[0].mxu1 %v198_v53 }
 0x143   :  { %885 = vmatprep.mubr.msk.f32.mxu1 %vm1245_vm0, %v1246_v1  ;;  %1032 = vmatpush3.bf16.msra.mxu1 %v1031_v61 }
 0x144   :  { %1033 = vmatprep.subr.bf16.mxu1 %v1244_v0 }
 0x147   :  { %1035 = vmatpush3.bf16.msra.mxu1 %v1034_v2 }
 0x148   :  { %1036 = vmatprep.subr.bf16.mxu1 %v1244_v0 }
 0x14b   :  { %1038 = vmatpush3.bf16.msra.mxu1 %v1037_v5 }
 0x14c   :  { %1039 = vmatprep.subr.bf16.mxu1 %v1244_v0 }
 0x14f   :  { %1041 = vmatpush3.bf16.msra.mxu1 %v1040_v8 }
 0x150   :  { %1042 = vmatprep.subr.bf16.mxu1 %v1244_v0 }
 0x153   :  { %1044 = vmatpush3.bf16.msra.mxu1 %v1043_v11 }
 0x154   :  { %1045 = vmatprep.subr.bf16.mxu1 %v1244_v0 }
 0x157   :  { %1047 = vmatpush3.bf16.msra.mxu1 %v1046_v14 }
 0x158   :  { %1048 = vmatprep.subr.bf16.mxu1 %v1244_v0 }
 0x15b   :  { %1050 = vmatpush3.bf16.msra.mxu1 %v1049_v19 }
 0x15c   :  { %1051 = vmatprep.subr.bf16.mxu1 %v1244_v0 }
 0x15f   :  { %1053 = vmatpush3.bf16.msra.mxu1 %v1052_v22 }
 0x160   :  { %1078 = vmatprep.subr.bf16.mxu1 %v1244_v0 }
 0x215   :  { %v267_v55 = vpop.f32.mrb[0].mxu1 }
 0x216   :  { %v1429_v56 = vsub.f32 %v198_v53, %v267_v55  ;;  %v817_v57 = vpop.f32.mrb[1].mxu1 }
 0x218   :  { %v272_v58 = vmul.f32 %v1429_v56, %v1429_v56 }
 0x21a   :  { %851 = vmatmul.mubr.f32.vlgmr.msra.gmra.mrb[2].mxu0 %v272_v58 }
 0x21b   :  { %1056 = vmatpush3.bf16.msra.mxu0 %v1367_v15  ;;  %920 = vmatprep.mubr.msk.f32.mxu0 %vm1245_vm0, %v1246_v1 }
 0x21c   :  { %1057 = vmatprep.subr.bf16.mxu0 %v1244_v0 }
 0x21f   :  { %1059 = vmatpush3.bf16.msra.mxu0 %v1371_v18 }
 0x220   :  { %1060 = vmatprep.subr.bf16.mxu0 %v1244_v0 }
 0x223   :  { %1062 = vmatpush3.bf16.msra.mxu0 %v1376_v24 }
 0x224   :  { %1063 = vmatprep.subr.bf16.mxu0 %v1244_v0 }
 0x227   :  { %1065 = vmatpush3.bf16.msra.mxu0 %v1381_v30 }
 0x228   :  { %1066 = vmatprep.subr.bf16.mxu0 %v1244_v0 }
 0x22b   :  { %1068 = vmatpush3.bf16.msra.mxu0 %v1386_v36 }
 0x22c   :  { %1069 = vmatprep.subr.bf16.mxu0 %v1244_v0 }
 0x22f   :  { %1071 = vmatpush3.bf16.msra.mxu0 %v1391_v42 }
 0x230   :  { %1072 = vmatprep.subr.bf16.mxu0 %v1244_v0 }
 0x233   :  { %1074 = vmatpush3.bf16.msra.mxu0 %v1396_v46 }
 0x234   :  { %1075 = vmatprep.subr.bf16.mxu0 %v1244_v0 }
 0x237   :  { %1077 = vmatpush3.bf16.msra.mxu0 %v1418_v50 }
 0x2ed   :  { %v339_v23 = vpop.f32.mrb[2].mxu0 }
 0x2ee   :  { %v340_v25 = vadd.f32 1e-05, %v339_v23  ;;  %v852_v26 = vpop.f32.mrb[3].mxu0 }
 0x2f0   :  { %1112 = vrsqrt.f32 %v340_v25 }
 0x2fa   :  { %v1113_v27 = vpop.eup %1112 }
 0x2fb   :  { %v344_v29 = vmul.f32 %v1113_v27, %v1429_v56 }
 0x2fd   :  { %v351_v32 = vmul.f32 %v641_v28, %v344_v29 }
 0x2ff   :  { %v358_v33 = vadd.f32 %v642_v31, %v351_v32 }
 0x301   :  { %v360_v34 = vmul.f32 0.70710677, %v358_v33  ;;  %v359_v37 = vmul.f32 0.5, %v358_v33 }
 0x303   :  { %1114 = verf.f32 %v360_v34 }
 0x30d   :  { %v1115_v35 = vpop.eup %1114 }
 0x30e   :  { %v362_v38 = vadd.f32 1.0, %v1115_v35 }
 0x310   :  { %v363_v39 = vmul.f32 %v362_v38, %v359_v37 }
 0x312   :  { %886 = vmatmul.mubr.f32.vlgmr.msra.gmra.mrb[2].mxu1 %v363_v39 }
 0x313   :  { %1080 = vmatpush3.bf16.msra.mxu1 %v1367_v15  ;;  %955 = vmatprep.mubr.msk.f32.mxu1 %vm1245_vm0, %v1246_v1  ;;  %v643_v1 = vld [vmem:[%s1510_s7] ss:$0 sm:$0xff] }
 0x314   :  { %1081 = vmatprep.subr.bf16.mxu1 %v1244_v0 }
 0x317   :  { %1083 = vmatpush3.bf16.msra.mxu1 %v1371_v18 }
 0x318   :  { %1084 = vmatprep.subr.bf16.mxu1 %v1244_v0 }
 0x31b   :  { %1086 = vmatpush3.bf16.msra.mxu1 %v1376_v24 }
 0x31c   :  { %1087 = vmatprep.subr.bf16.mxu1 %v1244_v0 }
 0x31f   :  { %1089 = vmatpush3.bf16.msra.mxu1 %v1381_v30 }
 0x320   :  { %1090 = vmatprep.subr.bf16.mxu1 %v1244_v0 }
 0x323   :  { %1092 = vmatpush3.bf16.msra.mxu1 %v1386_v36 }
 0x324   :  { %1093 = vmatprep.subr.bf16.mxu1 %v1244_v0 }
 0x327   :  { %1095 = vmatpush3.bf16.msra.mxu1 %v1391_v42 }
 0x328   :  { %1096 = vmatprep.subr.bf16.mxu1 %v1244_v0 }
 0x32b   :  { %1098 = vmatpush3.bf16.msra.mxu1 %v1396_v46 }
 0x32c   :  { %1099 = vmatprep.subr.bf16.mxu1 %v1244_v0 }
 0x32f   :  { %1101 = vmatpush3.bf16.msra.mxu1 %v1418_v50 }
 0x3e5   :  { %v455_v15 = vpop.f32.mrb[2].mxu1 }
 0x3e6   :  { %v456_v18 = vadd.f32 %v643_v1, %v455_v15  ;;  %v887_v24 = vpop.f32.mrb[3].mxu1 }
 0x3e8   :  { %921 = vmatmul.mubr.f32.vlgmr.msra.gmra.mrb[4].mxu0 %v456_v18 }
 0x4bb   :  { %v525_v30 = vpop.f32.mrb[4].mxu0 }
 0x4bc   :  { %v529_v36 = vsub.f32 %v456_v18, %v525_v30  ;;  %v922_v40 = vpop.f32.mrb[5].mxu0 }
 0x4be   :  { %v530_v41 = vmul.f32 %v529_v36, %v529_v36 }
 0x4c0   :  { %956 = vmatmul.mubr.f32.vlgmr.msra.gmra.mrb[4].mxu1 %v530_v41 }
 0x593   :  { %v597_v42 = vpop.f32.mrb[4].mxu1 }
 0x594   :  { %v598_v43 = vadd.f32 1e-05, %v597_v42  ;;  %v957_v44 = vpop.f32.mrb[5].mxu1 }
 0x596   :  { %1116 = vrsqrt.f32 %v598_v43 }
 0x5a0   :  { %v1117_v0 = vpop.eup %1116 }
 0x5a1   :  { %v602_v46 = vmul.f32 %v1117_v0, %v529_v36 }
 0x5a3   :  { %v609_v48 = vmul.f32 %v644_v45, %v602_v46 }
 0x5a5   :  { %v616_v49 = vadd.f32 %v645_v47, %v609_v48 }
 0x5a7   :  { %v618_v50 = vmul.f32 0.70710677, %v616_v49  ;;  %v617_v52 = vmul.f32 0.5, %v616_v49 }
 0x5a9   :  { %1118 = verf.f32 %v618_v50 }
 0x5b3   :  { %v1119_v51 = vpop.eup %1118 }
 0x5b4   :  { %v620_v53 = vadd.f32 1.0, %v1119_v51 }
 0x5b6   :  { %v621_v54 = vmul.f32 %v620_v53, %v617_v52 }
 0x5b8   :  { %622 = vst [vmem:[#allocation10] sm:$0xff] %v621_v54 }
 0x5b9   :  { %1219 = shalt.err (!%p1216_p8)
}
 0x5ba   :  { %s1220_s28 = scalar_lea.hbm %s1513_s10, 128 }
 0x5bb   :  { %p1221_p9 = scmp.ne.s32.totalorder %s1513_s10, %s1220_s28  ;;  %p1224_p10 = scmp.lt.u32.totalorder %s1220_s28, %s1513_s10 }
 0x5bd   :  { %p1226_p11 = pnand %p1224_p10, %p1221_p9 }
 0x5bf   :  { %1229 = shalt.err (!%p1226_p11)
}
 0x5c0   :  { %632 = dma.vmem_to_hbm [thread:$0]  %s630_s11, 128, %s1513_s10, [#allocation4]  }
 0x5c1   :  { %1236 = dma.done.wait [#allocation4], 128  }
 0x5c2   :  { %1237 = vsyncadd [#allocation4], 4294967168 }
 0x5c3   :  { %636 = vsyncpa [#allocation3], 1 }
 0x5c4   :  { %637 = vsyncpa [#allocation6], 1 }
 0x5c5   :  { %638 = vsyncpa [#allocation9], 1 }
 0x5c6   :  { %639 = vsyncpa [#allocation4], 1 }

</bundles_post_ra>
